<compile_context>
chip_gen: v7x
topology: tpu7x:2x2x1
jax: 0.10.0
libtpu: 0.0.40
codegen_flags: <defaults>
</compile_context>

<pallas_src>
import jax
import jax.numpy as jnp
from jax.experimental import pallas as pl
from jax.experimental.pallas import tpu as pltpu


_LANE = 128      # vreg lane width
_SUBLANE = 8     # f32 sublane count


def _pooler_kernel(x_ref, w_ref, b_ref, o_ref):
    """pooled = tanh(x @ W^T + b) for one (tb, tn) output tile.

    x_ref : (tb, H_in)   first-token rows
    w_ref : (tn, H_in)   PyTorch nn.Linear weight layout; contracted on axis 1
    b_ref : (1, tn)      lane-dense bias tile
    o_ref : (tb, tn)
    """
    acc = jax.lax.dot_general(
        x_ref[...], w_ref[...],
        dimension_numbers=(((1,), (1,)), ((), ())),   # x . W^T, no HBM transpose
        preferred_element_type=jnp.float32,
        precision=jax.lax.Precision.HIGHEST,
    )
    acc = acc + b_ref[...].astype(jnp.float32)
    o_ref[...] = jnp.tanh(acc).astype(o_ref.dtype)


def _choose_tiles(B, H_in, H_out, w_itemsize,
                  weight_stream_budget_bytes=24 * 1024 * 1024):
    """Pick (tb, tn) for a full-K (tk == H_in) weight-streaming matmul."""
    # Row (sublane) tile: poolers see small batches — take the full batch when
    # small, otherwise a sublane-aligned 128-row tile.
    tb = B if B <= 128 else 128

    # Output (lane) tile: every weight block carries the whole reduction, so
    # cap tn such that the double-buffered weight stream fits the budget
    # (sized for v7x's 64 MiB VMEM; v5e/v6e have 128 MiB physical).
    max_tn_vmem = max(_LANE, weight_stream_budget_bytes // (2 * H_in * w_itemsize))
    tn = min(H_out, 2048, max_tn_vmem)
    if tn < H_out:
        # Lane-aligned partial tile — never fall back to a full-extent weight
        # block (which can exceed VMEM for large, non-divisible hidden sizes).
        tn = max(_LANE, (tn // _LANE) * _LANE)

    # v7x has 2 TensorCores: if the batch axis is a single block, make sure
    # the H_out "parallel" axis has at least 2 blocks so neither core idles.
    if pl.cdiv(B, tb) == 1 and tn >= H_out and H_out >= 2 * _LANE:
        tn = max(_LANE, ((H_out // 2) // _LANE) * _LANE)

    return tb, tn


def sge_pooler(hidden_states, weight, bias):
    """tanh(hidden_states[:, 0] @ weight.T + bias) as one Pallas kernel.

    hidden_states : (B, L, H_in)
    weight        : (H_out, H_in)   PyTorch nn.Linear layout (NOT transposed)
    bias          : (H_out,)
    returns       : (B, H_out) in hidden_states.dtype
    """
    B, L, H_in = hidden_states.shape
    H_out, H_in_w = weight.shape
    assert H_in_w == H_in, "weight must be (H_out, H_in)"

    x_itemsize = hidden_states.dtype.itemsize
    w_itemsize = weight.dtype.itemsize
    tb, tn = _choose_tiles(B, H_in, H_out, w_itemsize)

    if H_in % _LANE == 0:
        # Fuse the first-token pick into the kernel DMA: merging (L, H) -> L*H
        # is a layout-preserving (free) reshape, and column-block 0 of each row
        # is exactly token 0's hidden vector.
        x = hidden_states.reshape(B, L * H_in)
    else:
        # TODO(synk): for H_in not a multiple of 128 keep a wrapper slice — a
        # fused (tb, 1, H_in) block would break the (8,128) block-shape rule.
        x = hidden_states[:, 0, :]

    x_spec = pl.BlockSpec((tb, H_in), lambda i, j: (i, 0))
    bias2d = bias.reshape(1, H_out)
    grid = (pl.cdiv(B, tb), pl.cdiv(H_out, tn))

    # Raise the scoped-VMEM limit explicitly (defaults: 16 MiB v5e / 32 MiB
    # v6e, v7x) so large full-K weight blocks double-buffer cleanly, while
    # staying well under v7x's 64 MiB physical VMEM.
    est_vmem = 2 * (tb * H_in * x_itemsize          # x blocks
                    + tn * H_in * w_itemsize        # weight blocks
                    + tn * bias2d.dtype.itemsize    # bias blocks
                    + tb * tn * x_itemsize)         # output blocks
    vmem_limit = int(min(56 * 1024 * 1024,
                         max(32 * 1024 * 1024, est_vmem + (8 << 20))))

    return pl.pallas_call(
        _pooler_kernel,
        out_shape=jax.ShapeDtypeStruct((B, H_out), hidden_states.dtype),
        grid=grid,
        in_specs=[
            x_spec,                                          # first-token rows
            pl.BlockSpec((tn, H_in), lambda i, j: (j, 0)),   # PyTorch-layout W
            pl.BlockSpec((1, tn), lambda i, j: (0, j)),      # lane-dense bias
        ],
        out_specs=pl.BlockSpec((tb, tn), lambda i, j: (i, j)),
        compiler_params=pltpu.CompilerParams(
            dimension_semantics=("parallel", "parallel"),
            vmem_limit_bytes=vmem_limit,
        ),
    )(x, weight, bias2d)


def init_pooler_params(key, hidden, dtype=jnp.float32):
    """nn.Linear(H, H) default init: U(-1/sqrt(H), 1/sqrt(H)) for W and b.

    (Store the params in bf16 to halve the dominant HBM stream if the model
    tolerates it — the kernel keeps f32 accumulation either way.)
    """
    bound = 1.0 / (hidden ** 0.5)
    k_w, k_b = jax.random.split(key)
    weight = jax.random.uniform(k_w, (hidden, hidden), dtype, -bound, bound)
    bias = jax.random.uniform(k_b, (hidden,), dtype, -bound, bound)
    return {"weight": weight, "bias": bias}


def protein_sge_pooler_forward(hidden_states, params):
    """Mirrors ProteinSGEPooler.forward (no per-call weight transpose)."""
    return sge_pooler(hidden_states, params["weight"], params["bias"])


if __name__ == "__main__":
    # Small but vreg-friendly demo shapes: batch multiple of 8 (sublane),
    # hidden multiple of 128 (lane-dense output, fused first-token pick).
    batch, seq_len, hidden = 8, 8, 128

    key = jax.random.PRNGKey(0)
    k_h, k_p = jax.random.split(key)

    hidden_states = jax.random.normal(k_h, (batch, seq_len, hidden), jnp.float32)
    params = init_pooler_params(k_p, hidden)

    pooled = jax.block_until_ready(
        protein_sge_pooler_forward(hidden_states, params))
    assert pooled.shape == (batch, hidden)

    # Pure-JAX reference of the PyTorch forward (full-precision f32 matmul).
    ref = jnp.tanh(
        jnp.dot(hidden_states[:, 0, :], params["weight"].T,
                precision=jax.lax.Precision.HIGHEST)
        + params["bias"])
    assert jnp.allclose(pooled, ref, rtol=1e-5, atol=1e-5), (
        "Pallas pooler mismatch vs reference")

    print("KERNEL_OK")
</pallas_src>

<mosaic_0001>
module attributes {stable_mosaic.version = 11 : i64} {
  func.func @_pooler_kernel(%arg0: i32, %arg1: i32, %arg2: memref<8x128xf32, #tpu.memory_space<vmem>>, %arg3: memref<128x128xf32, #tpu.memory_space<vmem>>, %arg4: memref<1x128xf32, #tpu.memory_space<vmem>>, %arg5: memref<8x128xf32, #tpu.memory_space<vmem>>) attributes {dimension_semantics = [#tpu.dimension_semantics<parallel>, #tpu.dimension_semantics<parallel>], iteration_bounds = array<i64: 1, 1>, scalar_prefetch = 0 : i64, scratch_operands = 0 : i64, tpu.core_type = #tpu.core_type<tc>, window_params = [{transform_indices = @transform_0, window_bounds = array<i64: 8, 128>}, {transform_indices = @transform_1, window_bounds = array<i64: 128, 128>}, {transform_indices = @transform_2, window_bounds = array<i64: 1, 128>}, {transform_indices = @transform_3, window_bounds = array<i64: 8, 128>}]} {
    %c0 = arith.constant 0 : index
    %c0_0 = arith.constant 0 : index
    %0 = vector.load %arg2[%c0, %c0_0] : memref<8x128xf32, #tpu.memory_space<vmem>>, vector<8x128xf32>
    %c0_1 = arith.constant 0 : index
    %c0_2 = arith.constant 0 : index
    %1 = vector.load %arg3[%c0_1, %c0_2] : memref<128x128xf32, #tpu.memory_space<vmem>>, vector<128x128xf32>
    %cst = arith.constant dense<0.000000e+00> : vector<8x128xf32>
    %2 = tpu.matmul %0, %1, %cst {dimension_numbers = #tpu.dot_dimension_numbers<[1], [1], [0], [0], [0, 0, 1, 0], [], []>, precision = #tpu.contract_precision<fp32>} : vector<8x128xf32>, vector<128x128xf32>, vector<8x128xf32> -> vector<8x128xf32>
    %c0_3 = arith.constant 0 : index
    %c0_4 = arith.constant 0 : index
    %3 = vector.load %arg4[%c0_3, %c0_4] : memref<1x128xf32, #tpu.memory_space<vmem>>, vector<1x128xf32>
    %4 = vector.broadcast %3 : vector<1x128xf32> to vector<8x128xf32>
    %5 = arith.addf %2, %4 : vector<8x128xf32>
    %6 = math.tanh %5 : vector<8x128xf32>
    %c0_5 = arith.constant 0 : index
    %c0_6 = arith.constant 0 : index
    %7 = vector.load %arg5[%c0_5, %c0_6] : memref<8x128xf32, #tpu.memory_space<vmem>>, vector<8x128xf32>
    tpu.vector_store %arg5[%c0_5, %c0_6], %6 {strides = array<i32>} : memref<8x128xf32, #tpu.memory_space<vmem>>, vector<8x128xf32>,
    return
  }
  func.func @transform_0(%arg0: i32, %arg1: i32) -> (i32, i32) {
    %c0_i32 = arith.constant 0 : i32
    %c0_i32_0 = arith.constant 0 : i32
    return %arg0, %c0_i32 : i32, i32
  }
  func.func @transform_1(%arg0: i32, %arg1: i32) -> (i32, i32) {
    %c0_i32 = arith.constant 0 : i32
    %c0_i32_0 = arith.constant 0 : i32
    return %arg1, %c0_i32 : i32, i32
  }
  func.func @transform_2(%arg0: i32, %arg1: i32) -> (i32, i32) {
    %c0_i32 = arith.constant 0 : i32
    %c0_i32_0 = arith.constant 0 : i32
    return %c0_i32, %arg1 : i32, i32
  }
  func.func @transform_3(%arg0: i32, %arg1: i32) -> (i32, i32) {
    %c0_i32 = arith.constant 0 : i32
    return %arg0, %arg1 : i32, i32
  }
}

</mosaic_0001>

<bundles_post_ra>
// kernel: tpu_custom_call.1
= control target key start
LH: loop header
LB: loop body
LE: loop exit
PB: predicated region body
PF: predicated region fallthrough
CT: control target
= control target key end

     0   :  { %8 = vsyncpa [#allocation3], 0  ;;  %s1565_s0 = inlined_call_operand.hbm [shape: f32[8,1024], index: 0, kind: input, shape index: {}]   ;;  %s1566_s1 = inlined_call_operand.hbm [shape: f32[128,128], index: 1, kind: input, shape index: {}]   ;;  %s1567_s2 = inlined_call_operand.vmem [shape: f32[1,128], index: 2, kind: input, shape index: {}]   ;;  %s1568_s3 = inlined_call_operand.hbm [shape: f32[8,128], index: 3, kind: output, shape index: {}]  }
   0x1   :  { %9 = vsyncpa [#allocation6], 0 }
   0x2   :  { %10 = vsyncpa [#allocation4], 0  ;;  %s1273_s12 = smov [#allocation2]   ;;  %s1274_s14 = smov [#allocation5]  }
   0x3   :  { %s17_s13 = sshll.u32 %s1273_s12, 4  ;;  %s26_s15 = sshll.u32 %s1274_s14, 4  ;;  %s18_s13 = int_to_ptr.vmem [resolvable:$true] %s17_s13  ;;  %s1301_s15 = int_to_ptr.vmem [resolvable:$true] %s26_s15 }
   0x4   :  { %s1201_s18 = scalar_lea.hbm %s1565_s0, 128  ;;  %s1203_s23 = scalar_lea.hbm %s1565_s0, 1024 }
   0x5   :  { %p1202_p0 = scmp.ne.s32.totalorder %s1565_s0, %s1201_s18  ;;  %p1204_p1 = scmp.lt.u32.totalorder %s1203_s23, %s1201_s18 }
   0x6   :  { %p1205_p2 = scmp.lt.u32.totalorder %s1201_s18, %s1565_s0 }
   0x8   :  { %p1206_p3 = por %p1205_p2, %p1204_p1 }
   0xa   :  { %p1207_p4 = pnand %p1206_p3, %p1202_p0 }
   0xc   :  { %1210 = shalt.err (!%p1207_p4)
}
   0xd   :  { %s1211_s26 = scalar_lea.vmem %s18_s13, 128  ;;  %p1216_p6 = scmp.lt.s32.totalorder %s18_s13, %s18_s13 }
   0xe   :  { %p1212_p5 = scmp.ne.s32.totalorder %s18_s13, %s1211_s26  ;;  %p1217_p7 = scmp.lt.s32.totalorder %s1211_s26, %s1211_s26 }
  0x10   :  { %p1218_p8 = por %p1217_p7, %p1216_p6 }
  0x12   :  { %p1219_p9 = pnand %p1218_p8, %p1212_p5 }
  0x14   :  { %1222 = shalt.err (!%p1219_p9)
}
  0x15   :  { %20 = dma.hbm_to_vmem [thread:$0]  %s1565_s0, 128, %s18_s13, [#allocation3]  }
  0x16   :  { %s1223_s4 = scalar_lea.hbm %s1566_s1, 2048 }
  0x17   :  { %p1224_p10 = scmp.ne.s32.totalorder %s1566_s1, %s1223_s4  ;;  %p1227_p11 = scmp.lt.u32.totalorder %s1223_s4, %s1566_s1 }
  0x19   :  { %p1229_p12 = pnand %p1227_p11, %p1224_p10 }
  0x1b   :  { %1232 = shalt.err (!%p1229_p12)
}
  0x1c   :  { %s1233_s9 = scalar_lea.vmem %s1301_s15, 2048  ;;  %p1238_p0 = scmp.lt.s32.totalorder %s1301_s15, %s1301_s15 }
  0x1d   :  { %p1234_p13 = scmp.ne.s32.totalorder %s1301_s15, %s1233_s9  ;;  %p1239_p1 = scmp.lt.s32.totalorder %s1233_s9, %s1233_s9 }
  0x1f   :  { %p1240_p2 = por %p1239_p1, %p1238_p0 }
  0x21   :  { %p1241_p3 = pnand %p1240_p2, %p1234_p13 }
  0x23   :  { %1244 = shalt.err (!%p1241_p3)
}
  0x24   :  { %s1275_s0 = smov 128   ;;  %s1276_s10 = smov 8  }
  0x25   :  { %32 = dma.hbm_to_vmem [thread:$0]  %s1566_s1, 2048, %s1301_s15, [#allocation6], %s1275_s0, %s1275_s0, %s1276_s10  }
  0x26   :  { %1267 = dma.done.wait [#allocation3], 128  }
  0x27   :  { %1268 = vsyncadd [#allocation3], 4294967168 }
  0x28   :  { %1269 = dma.done.wait [#allocation6], 2048  }
  0x29   :  { %1270 = vsyncadd [#allocation6], 4294965248  ;;  %v1277_v0 = vmov 0.0|0.0   ;;  %vm1278_vm0 = vmmov 0   ;;  %v1279_v1 = vmov 0.0   ;;  %v42_v2 = vld [vmem:[#allocation5] sm:$0xff] }
  0x2a   :  { %1037 = vmatprep.subr.bf16.mxu1 %v1277_v0  ;;  %1109 = vmatprep.subr.bf16.mxu0 %v1277_v0  ;;  %v43_v3 = vld [vmem:[#allocation5 + $0x8] sm:$0xff]  ;;  %v66_v4 = vand.u32 4294901760, %v42_v2  ;;  %v44_v6 = vld [vmem:[#allocation5 + $0x10] sm:$0xff]  ;;  %v45_v7 = vld [vmem:[#allocation5 + $0x18] sm:$0xff]  ;;  %s1280_s14 = smov [#allocation7]  }
  0x2b   :  { %859 = vmatprep.mubr.msk.f32.mxu1 %vm1278_vm0, %v1279_v1  ;;  %964 = vmatprep.mubr.msk.f32.mxu0 %vm1278_vm0, %v1279_v1  ;;  %v69_v5 = vand.u32 4294901760, %v43_v3  ;;  %v72_v9 = vand.u32 4294901760, %v44_v6  ;;  %v75_v10 = vand.u32 4294901760, %v45_v7  ;;  %v46_v12 = vld [vmem:[#allocation5 + $0x20] sm:$0xff]  ;;  %v47_v13 = vld [vmem:[#allocation5 + $0x28] sm:$0xff]  ;;  %v48_v17 = vld [vmem:[#allocation5 + $0x30] sm:$0xff] }
  0x2c   :  { %v78_v14 = vand.u32 4294901760, %v46_v12  ;;  %v81_v15 = vand.u32 4294901760, %v47_v13  ;;  %v49_v18 = vld [vmem:[#allocation5 + $0x38] sm:$0xff]  ;;  %v84_v19 = vand.u32 4294901760, %v48_v17  ;;  %v1359_v21 = vsub.f32 %v42_v2, %v66_v4  ;;  %v50_v23 = vld [vmem:[#allocation5 + $0x40] sm:$0xff]  ;;  %v51_v24 = vld [vmem:[#allocation5 + $0x48] sm:$0xff] }
  0x2d   :  { %v1341_v8 = vpack.c.bf16 %v69_v5, %v66_v4  ;;  %v1347_v11 = vpack.c.bf16 %v75_v10, %v72_v9  ;;  %v87_v20 = vand.u32 4294901760, %v49_v18  ;;  %v1361_v22 = vsub.f32 %v43_v3, %v69_v5  ;;  %v52_v41 = vld [vmem:[#allocation5 + $0x50] sm:$0xff]  ;;  %v53_v42 = vld [vmem:[#allocation5 + $0x58] sm:$0xff]  ;;  %v54_v49 = vld [vmem:[#allocation5 + $0x60] sm:$0xff]  ;;  %s714_s15 = sshll.u32 %s1280_s14, 4  ;;  %s715_s15 = int_to_ptr.vmem [resolvable:$true] %s714_s15 }
  0x2e   :  { %v1353_v16 = vpack.c.bf16 %v81_v15, %v78_v14  ;;  %v1363_v25 = vsub.f32 %v44_v6, %v72_v9  ;;  %v1365_v26 = vsub.f32 %v45_v7, %v75_v10  ;;  %v1367_v27 = vsub.f32 %v46_v12, %v78_v14  ;;  %v55_v50 = vld [vmem:[#allocation5 + $0x68] sm:$0xff]  ;;  %v41_v56 = vld [vmem:[#allocation2] sm:$0xff]  ;;  %v56_v58 = vld [vmem:[#allocation5 + $0x70] sm:$0xff]  ;;  %s1245_s16 = scalar_lea.vmem %s715_s15, 128  ;;  %p1250_p5 = scmp.lt.s32.totalorder %s715_s15, %s715_s15 }
  0x2f   :  { %1039 = vmatpush3.bf16.xpose.msra.mxu1 %v1341_v8  ;;  %1111 = vmatpush3.bf16.xpose.msra.mxu0 %v1341_v8  ;;  %v1369_v28 = vsub.f32 %v47_v13, %v81_v15  ;;  %v1371_v29 = vpack.c.bf16 %v87_v20, %v84_v19  ;;  %v1086_v30 = vpack.c.bf16 %v1361_v22, %v1359_v21  ;;  %v90_v33 = vand.u32 4294901760, %v50_v23  ;;  %v57_v59 = vld [vmem:[#allocation5 + $0x78] sm:$0xff]  ;;  %p1246_p4 = scmp.ne.s32.totalorder %s715_s15, %s1245_s16  ;;  %p1251_p6 = scmp.lt.s32.totalorder %s1245_s16, %s1245_s16 }
  0x30   :  { %1040 = vmatprep.subr.bf16.mxu1 %v1277_v0  ;;  %1112 = vmatprep.subr.bf16.mxu0 %v1277_v0  ;;  %v1375_v31 = vsub.f32 %v48_v17, %v84_v19  ;;  %v1377_v32 = vsub.f32 %v49_v18, %v87_v20  ;;  %v93_v34 = vand.u32 4294901760, %v51_v24  ;;  %v1089_v35 = vpack.c.bf16 %v1365_v26, %v1363_v25 }
  0x31   :  { %v1381_v36 = vsub.f32 %v50_v23, %v90_v33  ;;  %v1092_v38 = vpack.c.bf16 %v1369_v28, %v1367_v27  ;;  %v96_v44 = vand.u32 4294901760, %v52_v41  ;;  %v99_v45 = vand.u32 4294901760, %v53_v42  ;;  %p1252_p7 = por %p1251_p6, %p1250_p5 }
  0x32   :  { %v1383_v37 = vsub.f32 %v51_v24, %v93_v34  ;;  %v1095_v39 = vpack.c.bf16 %v1377_v32, %v1375_v31  ;;  %v1395_v43 = vpack.c.bf16 %v93_v34, %v90_v33  ;;  %v102_v52 = vand.u32 4294901760, %v54_v49 }
  0x33   :  { %v1397_v46 = vsub.f32 %v52_v41, %v96_v44  ;;  %v1399_v47 = vsub.f32 %v53_v42, %v99_v45  ;;  %v1407_v51 = vpack.c.bf16 %v99_v45, %v96_v44  ;;  %v105_v53 = vand.u32 4294901760, %v55_v50  ;;  %p1253_p8 = pnand %p1252_p7, %p1246_p4 }
  0x34   :  { %v1098_v40 = vpack.c.bf16 %v1383_v37, %v1381_v36  ;;  %v1409_v54 = vsub.f32 %v54_v49, %v102_v52  ;;  %v1419_v60 = vand.u32 4294901760, %v41_v56  ;;  %v108_v62 = vand.u32 4294901760, %v56_v58 }
  0x35   :  { %v1101_v48 = vpack.c.bf16 %v1399_v47, %v1397_v46  ;;  %v1411_v55 = vsub.f32 %v55_v50, %v105_v53  ;;  %v1421_v61 = vpack.c.bf16 %v105_v53, %v102_v52  ;;  %v111_v63 = vand.u32 4294901760, %v57_v59 }
  0x36   :  { %v1423_v2 = vsub.f32 %v56_v58, %v108_v62  ;;  %v1428_v4 = vsub.f32 %v41_v56, %v1419_v60  ;;  %v159_v5 = vand.u32 4294901760, %v1359_v21  ;;  %v166_v6 = vand.u32 4294901760, %v1361_v22 }
  0x37   :  { %1042 = vmatpush3.bf16.xpose.msra.mxu1 %v1347_v11  ;;  %1114 = vmatpush3.bf16.xpose.msra.mxu0 %v1347_v11  ;;  %v1104_v57 = vpack.c.bf16 %v1411_v55, %v1409_v54  ;;  %v1425_v3 = vsub.f32 %v57_v59, %v111_v63  ;;  %v1439_v10 = vpack.c.bf16 %v111_v63, %v108_v62  ;;  %v173_v18 = vand.u32 4294901760, %v1363_v25 }
  0x38   :  { %1043 = vmatprep.subr.bf16.mxu1 %v1277_v0  ;;  %1115 = vmatprep.subr.bf16.mxu0 %v1277_v0  ;;  %v148_v9 = vand.u32 4294901760, %v1428_v4  ;;  %v160_v12 = vsub.f32 %v1359_v21, %v159_v5  ;;  %v167_v13 = vsub.f32 %v1361_v22, %v166_v6  ;;  %v180_v19 = vand.u32 4294901760, %v1365_v26 }
  0x39   :  { %v1107_v7 = vpack.c.bf16 %v1425_v3, %v1423_v2  ;;  %v1134_v24 = vpack.c.bf16 %v166_v6, %v159_v5  ;;  %v174_v33 = vsub.f32 %v1363_v25, %v173_v18  ;;  %v187_v44 = vand.u32 4294901760, %v1367_v27 }
  0x3a   :  { %v149_v14 = vsub.f32 %v1428_v4, %v148_v9  ;;  %v161_v15 = vand.u32 4294901760, %v160_v12  ;;  %v168_v17 = vand.u32 4294901760, %v167_v13  ;;  %v181_v34 = vsub.f32 %v1365_v26, %v180_v19 }
  0x3b   :  { %v175_v41 = vand.u32 4294901760, %v174_v33  ;;  %v194_v45 = vand.u32 4294901760, %v1369_v28  ;;  %v1137_v50 = vpack.c.bf16 %v180_v19, %v173_v18  ;;  %v188_v52 = vsub.f32 %v1367_v27, %v187_v44 }
  0x3c   :  { %v150_v20 = vand.u32 4294901760, %v149_v14  ;;  %v1062_v23 = vpack.c.bf16 %v168_v17, %v161_v15  ;;  %v182_v42 = vand.u32 4294901760, %v181_v34  ;;  %v201_v59 = vand.u32 4294901760, %v1375_v31 }
  0x3d   :  { %v195_v53 = vsub.f32 %v1369_v28, %v194_v45  ;;  %v189_v56 = vand.u32 4294901760, %v188_v52  ;;  %v208_v62 = vand.u32 4294901760, %v1377_v32  ;;  %v1140_v5 = vpack.c.bf16 %v194_v45, %v187_v44 }
  0x3e   :  { %v1065_v49 = vpack.c.bf16 %v182_v42, %v175_v41  ;;  %v202_v6 = vsub.f32 %v1375_v31, %v201_v59  ;;  %v215_v14 = vand.u32 4294901760, %v1381_v36  ;;  %v222_v15 = vand.u32 4294901760, %v1383_v37 }
  0x3f   :  { %1045 = vmatpush3.bf16.xpose.msra.mxu1 %v1353_v16  ;;  %1117 = vmatpush3.bf16.xpose.msra.mxu0 %v1353_v16  ;;  %v196_v58 = vand.u32 4294901760, %v195_v53  ;;  %v1143_v18 = vpack.c.bf16 %v208_v62, %v201_v59  ;;  %v229_v33 = vand.u32 4294901760, %v1397_v46  ;;  %v236_v34 = vand.u32 4294901760, %v1399_v47 }
  0x40   :  { %1046 = vmatprep.subr.bf16.mxu1 %v1277_v0  ;;  %1118 = vmatprep.subr.bf16.mxu0 %v1277_v0  ;;  %v203_v12 = vand.u32 4294901760, %v202_v6  ;;  %v216_v19 = vsub.f32 %v1381_v36, %v215_v14  ;;  %v1146_v42 = vpack.c.bf16 %v222_v15, %v215_v14  ;;  %v243_v52 = vand.u32 4294901760, %v1409_v54 }
  0x41   :  { %v1068_v63 = vpack.c.bf16 %v196_v58, %v189_v56  ;;  %v230_v44 = vsub.f32 %v1397_v46, %v229_v33  ;;  %v237_v45 = vsub.f32 %v1399_v47, %v236_v34  ;;  %v250_v53 = vand.u32 4294901760, %v1411_v55 }
  0x42   :  { %v1149_v58 = vpack.c.bf16 %v236_v34, %v229_v33  ;;  %v244_v59 = vsub.f32 %v1409_v54, %v243_v52  ;;  %v257_v6 = vand.u32 4294901760, %v1423_v2 }
  0x44   :  { %v258_v14 = vsub.f32 %v1423_v2, %v257_v6 }
  0x47   :  { %1048 = vmatpush3.bf16.xpose.msra.mxu1 %v1371_v29  ;;  %1120 = vmatpush3.bf16.xpose.msra.mxu0 %v1371_v29 }
  0x48   :  { %1049 = vmatprep.subr.bf16.mxu1 %v1277_v0  ;;  %1121 = vmatprep.subr.bf16.mxu0 %v1277_v0 }
  0x4f   :  { %1051 = vmatpush3.bf16.xpose.msra.mxu1 %v1395_v43  ;;  %1123 = vmatpush3.bf16.xpose.msra.mxu0 %v1395_v43 }
  0x50   :  { %1052 = vmatprep.subr.bf16.mxu1 %v1277_v0  ;;  %1124 = vmatprep.subr.bf16.mxu0 %v1277_v0 }
  0x57   :  { %1054 = vmatpush3.bf16.xpose.msra.mxu1 %v1407_v51  ;;  %1126 = vmatpush3.bf16.xpose.msra.mxu0 %v1407_v51 }
  0x58   :  { %1055 = vmatprep.subr.bf16.mxu1 %v1277_v0  ;;  %1127 = vmatprep.subr.bf16.mxu0 %v1277_v0 }
  0x5f   :  { %1057 = vmatpush3.bf16.xpose.msra.mxu1 %v1421_v61  ;;  %1129 = vmatpush3.bf16.xpose.msra.mxu0 %v1421_v61 }
  0x60   :  { %1058 = vmatprep.subr.bf16.mxu1 %v1277_v0  ;;  %1130 = vmatprep.subr.bf16.mxu0 %v1277_v0 }
  0x67   :  { %1060 = vmatpush3.bf16.xpose.msra.mxu1 %v1439_v10  ;;  %1132 = vmatpush3.bf16.xpose.msra.mxu0 %v1439_v10 }
  0x68   :  { %1061 = vmatprep.subr.bf16.mxu1 %v1277_v0  ;;  %1133 = vmatprep.subr.bf16.mxu0 %v1277_v0 }
  0x6e   :  { %860 = vmatmul.mubr.f32.vlgmr.msra.gmra.mrb[0].mxu1 %v150_v20  ;;  %965 = vmatmul.mubr.f32.vlgmr.msra.gmra.mrb[0].mxu0 %v148_v9  ;;  %v209_v9 = vsub.f32 %v1377_v32, %v208_v62  ;;  %v223_v20 = vsub.f32 %v1383_v37, %v222_v15  ;;  %v251_v62 = vsub.f32 %v1411_v55, %v250_v53 }
  0x6f   :  { %1063 = vmatpush3.bf16.xpose.msra.mxu1 %v1062_v23  ;;  %1135 = vmatpush3.bf16.xpose.msra.mxu0 %v1134_v24  ;;  %v217_v23 = vand.u32 4294901760, %v216_v19 }
  0x70   :  { %1064 = vmatprep.subr.bf16.mxu1 %v1277_v0  ;;  %1136 = vmatprep.subr.bf16.mxu0 %v1277_v0  ;;  %v210_v13 = vand.u32 4294901760, %v209_v9  ;;  %v224_v24 = vand.u32 4294901760, %v223_v20  ;;  %v264_v9 = vand.u32 4294901760, %v1425_v3 }
  0x71   :  { %894 = vmatprep.mubr.msk.f32.mxu1 %vm1278_vm0, %v1279_v1  ;;  %999 = vmatprep.mubr.msk.f32.mxu0 %vm1278_vm0, %v1279_v1 }
  0x72   :  { %v1071_v17 = vpack.c.bf16 %v210_v13, %v203_v12  ;;  %v1074_v41 = vpack.c.bf16 %v224_v24, %v217_v23  ;;  %v1152_v13 = vpack.c.bf16 %v250_v53, %v243_v52  ;;  %v265_v15 = vsub.f32 %v1425_v3, %v264_v9 }
  0x73   :  { %v1155_v20 = vpack.c.bf16 %v264_v9, %v257_v6 }
  0x77   :  { %1066 = vmatpush3.bf16.xpose.msra.mxu1 %v1065_v49  ;;  %1138 = vmatpush3.bf16.xpose.msra.mxu0 %v1137_v50  ;;  %v231_v49 = vand.u32 4294901760, %v230_v44  ;;  %v238_v50 = vand.u32 4294901760, %v237_v45 }
  0x78   :  { %1067 = vmatprep.subr.bf16.mxu1 %v1277_v0  ;;  %1139 = vmatprep.subr.bf16.mxu0 %v1277_v0 }
  0x79   :  { %v1077_v56 = vpack.c.bf16 %v238_v50, %v231_v49 }
  0x7f   :  { %1069 = vmatpush3.bf16.xpose.msra.mxu1 %v1068_v63  ;;  %1141 = vmatpush3.bf16.xpose.msra.mxu0 %v1140_v5  ;;  %v245_v63 = vand.u32 4294901760, %v244_v59  ;;  %v252_v5 = vand.u32 4294901760, %v251_v62 }
  0x80   :  { %1070 = vmatprep.subr.bf16.mxu1 %v1277_v0  ;;  %1142 = vmatprep.subr.bf16.mxu0 %v1277_v0 }
  0x81   :  { %v1080_v12 = vpack.c.bf16 %v252_v5, %v245_v63 }
  0x87   :  { %1072 = vmatpush3.bf16.xpose.msra.mxu1 %v1071_v17  ;;  %1144 = vmatpush3.bf16.xpose.msra.mxu0 %v1143_v18  ;;  %v259_v17 = vand.u32 4294901760, %v258_v14  ;;  %v266_v18 = vand.u32 4294901760, %v265_v15 }
  0x88   :  { %1073 = vmatprep.subr.bf16.mxu1 %v1277_v0  ;;  %1145 = vmatprep.subr.bf16.mxu0 %v1277_v0 }
  0x89   :  { %v1083_v19 = vpack.c.bf16 %v266_v18, %v259_v17 }
  0x8f   :  { %1075 = vmatpush3.bf16.xpose.msra.mxu1 %v1074_v41  ;;  %1147 = vmatpush3.bf16.xpose.msra.mxu0 %v1146_v42 }
  0x90   :  { %1076 = vmatprep.subr.bf16.mxu1 %v1277_v0  ;;  %1148 = vmatprep.subr.bf16.mxu0 %v1277_v0 }
  0x97   :  { %1078 = vmatpush3.bf16.xpose.msra.mxu1 %v1077_v56  ;;  %1150 = vmatpush3.bf16.xpose.msra.mxu0 %v1149_v58 }
  0x98   :  { %1079 = vmatprep.subr.bf16.mxu1 %v1277_v0  ;;  %1151 = vmatprep.subr.bf16.mxu0 %v1277_v0 }
  0x9f   :  { %1081 = vmatpush3.bf16.xpose.msra.mxu1 %v1080_v12  ;;  %1153 = vmatpush3.bf16.xpose.msra.mxu0 %v1152_v13 }
  0xa0   :  { %1082 = vmatprep.subr.bf16.mxu1 %v1277_v0  ;;  %1154 = vmatprep.subr.bf16.mxu0 %v1277_v0 }
  0xa7   :  { %1084 = vmatpush3.bf16.xpose.msra.mxu1 %v1083_v19  ;;  %1156 = vmatpush3.bf16.xpose.msra.mxu0 %v1155_v20 }
  0xa8   :  { %1085 = vmatprep.subr.bf16.mxu1 %v1277_v0  ;;  %1157 = vmatprep.subr.bf16.mxu0 %v1277_v0 }
  0xae   :  { %895 = vmatmul.mubr.f32.vlgmr.msra.gmra.mrb[0].mxu1 %v1419_v60  ;;  %1000 = vmatmul.mubr.f32.vlgmr.msra.gmra.mrb[0].mxu0 %v1419_v60 }
  0xaf   :  { %1087 = vmatpush3.bf16.xpose.msra.mxu1 %v1086_v30  ;;  %1159 = vmatpush3.bf16.xpose.msra.mxu0 %v1341_v8 }
  0xb0   :  { %1088 = vmatprep.subr.bf16.mxu1 %v1277_v0  ;;  %1160 = vmatprep.subr.bf16.mxu0 %v1277_v0 }
  0xb1   :  { %929 = vmatprep.mubr.msk.f32.mxu1 %vm1278_vm0, %v1279_v1  ;;  %1034 = vmatprep.mubr.msk.f32.mxu0 %vm1278_vm0, %v1279_v1  ;;  %v724_v1 = vld [vmem:[%s1567_s2] ss:$0 sm:$0xff] }
  0xb7   :  { %1090 = vmatpush3.bf16.xpose.msra.mxu1 %v1089_v35  ;;  %1162 = vmatpush3.bf16.xpose.msra.mxu0 %v1347_v11 }
  0xb8   :  { %1091 = vmatprep.subr.bf16.mxu1 %v1277_v0  ;;  %1163 = vmatprep.subr.bf16.mxu0 %v1277_v0 }
  0xbf   :  { %1093 = vmatpush3.bf16.xpose.msra.mxu1 %v1092_v38  ;;  %1165 = vmatpush3.bf16.xpose.msra.mxu0 %v1353_v16 }
  0xc0   :  { %1094 = vmatprep.subr.bf16.mxu1 %v1277_v0  ;;  %1166 = vmatprep.subr.bf16.mxu0 %v1277_v0 }
  0xc7   :  { %1096 = vmatpush3.bf16.xpose.msra.mxu1 %v1095_v39  ;;  %1168 = vmatpush3.bf16.xpose.msra.mxu0 %v1371_v29 }
  0xc8   :  { %1097 = vmatprep.subr.bf16.mxu1 %v1277_v0  ;;  %1169 = vmatprep.subr.bf16.mxu0 %v1277_v0 }
  0xcf   :  { %1099 = vmatpush3.bf16.xpose.msra.mxu1 %v1098_v40  ;;  %1171 = vmatpush3.bf16.xpose.msra.mxu0 %v1395_v43 }
  0xd0   :  { %1100 = vmatprep.subr.bf16.mxu1 %v1277_v0  ;;  %1172 = vmatprep.subr.bf16.mxu0 %v1277_v0 }
  0xd7   :  { %1102 = vmatpush3.bf16.xpose.msra.mxu1 %v1101_v48  ;;  %1174 = vmatpush3.bf16.xpose.msra.mxu0 %v1407_v51 }
  0xd8   :  { %1103 = vmatprep.subr.bf16.mxu1 %v1277_v0  ;;  %1175 = vmatprep.subr.bf16.mxu0 %v1277_v0 }
  0xdf   :  { %1105 = vmatpush3.bf16.xpose.msra.mxu1 %v1104_v57  ;;  %1177 = vmatpush3.bf16.xpose.msra.mxu0 %v1421_v61 }
  0xe0   :  { %1106 = vmatprep.subr.bf16.mxu1 %v1277_v0  ;;  %1178 = vmatprep.subr.bf16.mxu0 %v1277_v0 }
  0xe7   :  { %1108 = vmatpush3.bf16.xpose.msra.mxu1 %v1107_v7  ;;  %1180 = vmatpush3.bf16.xpose.msra.mxu0 %v1439_v10 }
  0xee   :  { %930 = vmatmul.mubr.f32.vlgmr.msra.gmra.mrb[0].mxu1 %v1428_v4  ;;  %1035 = vmatmul.mubr.f32.vlgmr.msra.gmra.mrb[0].mxu0 %v1419_v60 }
 0x1c1   :  { %v407_v8 = vpop.f32.mrb[0].mxu1  ;;  %v702_v11 = vpop.f32.mrb[0].mxu0 }
 0x1c2   :  { %v1181_v16 = vadd.f32 %v724_v1, %v407_v8  ;;  %v931_v21 = vpop.f32.mrb[1].mxu1  ;;  %v1036_v22 = vpop.f32.mrb[1].mxu0 }
 0x1c4   :  { %v1182_v0 = vadd.f32 %v1181_v16, %v702_v11 }
 0x1c6   :  { %1199 = vtanh.f32 %v1182_v0 }
 0x1d0   :  { %v1200_v25 = vpop.eup %1199 }
 0x1d1   :  { %707 = vst [vmem:[#allocation7] sm:$0xff] %v1200_v25 }
 0x1d2   :  { %1256 = shalt.err (!%p1253_p8)
}
 0x1d3   :  { %s1257_s18 = scalar_lea.hbm %s1568_s3, 128 }
 0x1d4   :  { %p1258_p9 = scmp.ne.s32.totalorder %s1568_s3, %s1257_s18  ;;  %p1261_p10 = scmp.lt.u32.totalorder %s1257_s18, %s1568_s3 }
 0x1d6   :  { %p1263_p11 = pnand %p1261_p10, %p1258_p9 }
 0x1d8   :  { %1266 = shalt.err (!%p1263_p11)
}
 0x1d9   :  { %717 = dma.vmem_to_hbm [thread:$0]  %s715_s15, 128, %s1568_s3, [#allocation4]  }
 0x1da   :  { %1271 = dma.done.wait [#allocation4], 128  }
 0x1db   :  { %1272 = vsyncadd [#allocation4], 4294967168 }
 0x1dc   :  { %721 = vsyncpa [#allocation3], 1 }
 0x1dd   :  { %722 = vsyncpa [#allocation6], 1 }
 0x1de   :  { %723 = vsyncpa [#allocation4], 1 }

</bundles_post_ra>
